<compile_context>
chip_gen: v7x
topology: tpu7x:2x2x1
jax: 0.10.0
libtpu: 0.0.40
codegen_flags: <defaults>
</compile_context>

<pallas_src>
import functools
import math

import jax
import jax.numpy as jnp
import numpy as np
from jax import lax
from jax.experimental import pallas as pl
from jax.experimental.pallas import tpu as pltpu

_NEG_INF = -1e30


def _lcm(a, b):
    return a * b // math.gcd(a, b)


# ----------------------------------------------------------------------------
# Pallas kernel: one block of MB tokens (all groups of ONE path: global OR
# local), channel-first.  All intermediates keep tokens on the lane axis.
# ----------------------------------------------------------------------------
def _gla_block_kernel(path_ids_ref,                 # scalar-prefetch (unused in body)
                      x_ref, y_ref, mask_ref, wc_ref, we_ref, bias_ref,
                      o_ref, *, c, e):
    f32 = jnp.float32
    del path_ids_ref

    wc = wc_ref[0]        # (2C+3E, C) packed C-contracting weights (transposed)
    we = we_ref[0]        # (2E+C, E)  packed E-contracting weights (transposed)
    bv = bias_ref[0]      # (3C+4E, 1) packed bias column

    # Static slices of the packed slabs.
    w1x_t = wc[0:c, :]                        # (C, C)
    w2x_t = wc[c:c + e, :]                    # (E, C)
    w1y_t = wc[c + e:2 * c + e, :]            # (C, C)
    wkv_t = wc[2 * c + e:2 * c + 3 * e, :]    # (2E, C)  proj_y.fc2 folded in
    wq_t = we[0:e, :]                         # (E, E)   softmax scale folded in
    w1e_t = we[e:2 * e, :]                    # (E, E)
    w2e_t = we[2 * e:2 * e + c, :]            # (C, E)
    b1x = bv[0:c, :]
    b2x = bv[c:c + e, :]
    b1y = bv[c + e:2 * c + e, :]
    bkv = bv[2 * c + e:2 * c + 3 * e, :]
    b1e = bv[2 * c + 3 * e:2 * c + 4 * e, :]
    b2e = bv[2 * c + 4 * e:3 * c + 4 * e, :]

    x = x_ref[...]        # (C, MB)  channel-first tokens
    y = y_ref[...]        # (C, MB)

    # proj_x / proj_y Mlps (transposed form: W^T @ X, bias broadcast over lanes)
    hx = jnp.maximum(jnp.dot(w1x_t, x, preferred_element_type=f32) + b1x, 0.0)
    xe = jnp.dot(w2x_t, hx, preferred_element_type=f32) + b2x          # (E, MB)
    hy = jnp.maximum(jnp.dot(w1y_t, y, preferred_element_type=f32) + b1y, 0.0)
    kv = jnp.dot(wkv_t, hy, preferred_element_type=f32) + bkv          # (2E, MB)
    k = kv[0:e, :]
    v = kv[e:2 * e, :]

    # CrossAttention with block-diagonal mask over the whole MB-token block.
    q = jnp.dot(wq_t, xe, preferred_element_type=f32)                  # (E, MB)
    # s[m, n] = k_m . q_n   (keys on sublanes, queries on lanes)
    s = lax.dot_general(k, q, (((0,), (0,)), ((), ())),
                        preferred_element_type=f32)                    # (MB, MB)
    s = s + mask_ref[0]
    s = s - jnp.max(s, axis=0, keepdims=True)
    p = jnp.exp(s)
    denom = jnp.sum(p, axis=0, keepdims=True)                          # (1, MB)
    ctx = jnp.dot(v, p, preferred_element_type=f32)                    # (E, MB)
    xg = xe + ctx * pl.reciprocal(denom, approx=True)                  # residual

    # expand Mlp; output stays channel-first (C, MB) -> lane-dense stores.
    # TODO(synk): C=4 uses 4/8 sublanes of the output vregs (v5e store slot).
    he = jnp.maximum(jnp.dot(w1e_t, xg, preferred_element_type=f32) + b1e, 0.0)
    o_ref[...] = jnp.dot(w2e_t, he, preferred_element_type=f32) + b2e


# ----------------------------------------------------------------------------
# Weight packing (layout plumbing, done once in XLA):
#   * fold softmax scale into Wq
#   * fuse K/V and fold proj_y.fc2 into the fused projection
#   * transpose everything for the channel-first kernel
#   * pack into 3 slabs (C-contracting mats, E-contracting mats, biases)
# ----------------------------------------------------------------------------
def _pack_path_weights(P, scale):
    wkv = jnp.concatenate([P["wk"], P["wv"]], axis=1)       # (E, 2E)
    wkv_f = P["w2y"] @ wkv                                   # (C, 2E)
    bkv_f = P["b2y"] @ wkv                                   # (1, 2E)
    wc = jnp.concatenate(
        [P["w1x"].T, P["w2x"].T, P["w1y"].T, wkv_f.T], axis=0)      # (2C+3E, C)
    we = jnp.concatenate(
        [(P["wq"] * scale).T, P["w1e"].T, P["w2e"].T], axis=0)      # (2E+C, E)
    bias = jnp.concatenate(
        [P["b1x"].T, P["b2x"].T, P["b1y"].T, bkv_f.T,
         P["b1e"].T, P["b2e"].T], axis=0)                           # (3C+4E, 1)
    return wc, we, bias


def _block_diag_mask(mb, n):
    g = np.arange(mb) // n
    return np.where(g[:, None] == g[None, :], 0.0, _NEG_INF).astype(np.float32)


def _choose_block_tokens(n_g, n_l, cap=2048):
    """MB: a multiple of both group sizes (whole groups per block) and of 128
    (lane-dense blocks)."""
    base = _lcm(n_g, n_l)
    mb = _lcm(base, 128)
    if mb > cap:
        # TODO(synk): very large / unaligned group sizes would be better
        # served by per-path calls with flash-style attention.
        mb = base
    return mb


# ----------------------------------------------------------------------------
# Fused token pipeline: one pallas_call covering both guidance paths.
# ----------------------------------------------------------------------------
def fused_token_pipeline(xg_cf, yg_cf, xl_cf, yl_cf, gparams, lparams,
                         n_g, n_l, scale):
    C = xg_cf.shape[0]
    E = gparams["wq"].shape[0]
    MB = _choose_block_tokens(n_g, n_l)

    m_g, m_l = xg_cf.shape[1], xl_cf.shape[1]
    nb_g = -(-m_g // MB)
    nb_l = -(-m_l // MB)
    pad_g = nb_g * MB - m_g
    pad_l = nb_l * MB - m_l
    nb = nb_g + nb_l

    def padcat(a_g, a_l):
        a_g = jnp.pad(a_g, ((0, 0), (0, pad_g)))
        a_l = jnp.pad(a_l, ((0, 0), (0, pad_l)))
        return jnp.concatenate([a_g, a_l], axis=1)

    x_all = padcat(xg_cf, xl_cf)                     # (C, nb*MB)
    y_all = padcat(yg_cf, yl_cf)
    m_total = x_all.shape[1]

    wc_g, we_g, b_g = _pack_path_weights(gparams, scale)
    wc_l, we_l, b_l = _pack_path_weights(lparams, scale)
    wc = jnp.stack([wc_g, wc_l])                     # (2, 2C+3E, C)
    we = jnp.stack([we_g, we_l])                     # (2, 2E+C, E)
    bv = jnp.stack([b_g, b_l])                       # (2, 3C+4E, 1)
    masks = jnp.stack([jnp.asarray(_block_diag_mask(MB, n_g)),
                       jnp.asarray(_block_diag_mask(MB, n_l))])   # (2, MB, MB)
    path_ids = jnp.array([0] * nb_g + [1] * nb_l, dtype=jnp.int32)

    tok_spec = pl.BlockSpec((C, MB), lambda i, pids: (0, i))
    out_spec = pl.BlockSpec((C, MB), lambda i, pids: (0, i))

    def path_spec(arr):
        return pl.BlockSpec((1,) + arr.shape[1:],
                            lambda i, pids: (pids[i], 0, 0))

    flops = int(2 * m_total * (2 * C * C + 4 * C * E + 2 * E * E + 2 * E * MB))
    bytes_accessed = int(4 * (3 * C * m_total + masks.size
                              + wc.size + we.size + bv.size))
    cost = pl.CostEstimate(flops=flops,
                           transcendentals=int(m_total * MB),
                           bytes_accessed=bytes_accessed)

    block_bytes = 4 * (3 * C * MB + MB * MB
                       + wc.size // 2 + we.size // 2 + bv.size // 2)
    vmem_limit = int(min(48 * 2**20, max(16 * 2**20, 8 * block_bytes)))

    out = pl.pallas_call(
        functools.partial(_gla_block_kernel, c=C, e=E),
        out_shape=jax.ShapeDtypeStruct((C, m_total), jnp.float32),
        grid_spec=pltpu.PrefetchScalarGridSpec(
            num_scalar_prefetch=1,
            grid=(nb,),
            in_specs=[tok_spec, tok_spec, path_spec(masks),
                      path_spec(wc), path_spec(we), path_spec(bv)],
            out_specs=out_spec,
        ),
        compiler_params=pltpu.CompilerParams(
            dimension_semantics=("parallel",),
            vmem_limit_bytes=vmem_limit),
        cost_estimate=cost,
    )(path_ids, x_all, y_all, masks, wc, we, bv)

    out_g = out[:, :m_g]
    out_l = out[:, nb_g * MB:nb_g * MB + m_l]
    return out_g, out_l


# ----------------------------------------------------------------------------
# GLA forward = GlobalGuidance(x, y) + LocalGuidance(x, y)   (Pallas path)
# ----------------------------------------------------------------------------
def gla_forward(x, y, gparams, lparams, patch_size):
    B, C, H, W = x.shape
    p = patch_size
    Hp, Wp = H // p, W // p
    E = gparams["wq"].shape[0]
    scale = 1.0 / math.sqrt(E)
    n_g = Hp * Wp          # tokens per group, global (group = batch element)
    n_l = p * p            # tokens per group, local  (group = window)

    # ---- global tokens: maxpool + channel-first flatten -> (C, B*Ng) ----
    xp = jnp.max(x.reshape(B, C, Hp, p, Wp, p), axis=(3, 5))
    yp = jnp.max(y.reshape(B, C, Hp, p, Wp, p), axis=(3, 5))
    xg_cf = xp.transpose(1, 0, 2, 3).reshape(C, B * n_g)
    yg_cf = yp.transpose(1, 0, 2, 3).reshape(C, B * n_g)

    # ---- local tokens: window partition, channel-first -> (C, B*Hp*Wp*p*p) --
    def windows_cf(t):
        return (t.reshape(B, C, Hp, p, Wp, p)
                 .transpose(1, 0, 2, 4, 3, 5)
                 .reshape(C, B * Hp * Wp * p * p))
    xl_cf = windows_cf(x)
    yl_cf = windows_cf(y)

    og_cf, ol_cf = fused_token_pipeline(xg_cf, yg_cf, xl_cf, yl_cf,
                                        gparams, lparams, n_g, n_l, scale)

    # global: (C, B*Ng) -> (B, C, Hp, Wp) -> nearest upsample by p
    xg_out = og_cf.reshape(C, B, Hp, Wp).transpose(1, 0, 2, 3)
    xg_out = jnp.repeat(jnp.repeat(xg_out, p, axis=2), p, axis=3)

    # local: (C, B*Hp*Wp*p*p) -> (B, C, H, W) window merge
    xl_out = (ol_cf.reshape(C, B, Hp, Wp, p, p)
                   .transpose(1, 0, 2, 4, 3, 5)
                   .reshape(B, C, H, W))
    return xg_out + xl_out


# ----------------------------------------------------------------------------
# Deterministic parameter init (PyTorch nn.Linear-style uniform bounds).
# Weights stored as (in, out) so reference computes x @ W (= PyTorch x @ W.T).
# ----------------------------------------------------------------------------
def _lin_w(key, fan_in, fan_out):
    bound = 1.0 / math.sqrt(fan_in)
    return jax.random.uniform(key, (fan_in, fan_out), jnp.float32, -bound, bound)


def _lin_b(key, fan_in, fan_out):
    bound = 1.0 / math.sqrt(fan_in)
    return jax.random.uniform(key, (1, fan_out), jnp.float32, -bound, bound)


def make_guidance_params(key, C, E):
    ks = jax.random.split(key, 15)
    p = {}
    p["w1x"] = _lin_w(ks[0], C, C); p["b1x"] = _lin_b(ks[1], C, C)
    p["w2x"] = _lin_w(ks[2], C, E); p["b2x"] = _lin_b(ks[3], C, E)
    p["w1y"] = _lin_w(ks[4], C, C); p["b1y"] = _lin_b(ks[5], C, C)
    p["w2y"] = _lin_w(ks[6], C, E); p["b2y"] = _lin_b(ks[7], C, E)
    p["wq"] = _lin_w(ks[8], E, E)
    p["wk"] = _lin_w(ks[9], E, E)
    p["wv"] = _lin_w(ks[10], E, E)
    p["w1e"] = _lin_w(ks[11], E, E); p["b1e"] = _lin_b(ks[12], E, E)
    p["w2e"] = _lin_w(ks[13], E, C); p["b2e"] = _lin_b(ks[14], E, C)
    return p


# ----------------------------------------------------------------------------
# Pure-JAX reference (mirrors the PyTorch module, dropout = identity).
# ----------------------------------------------------------------------------
def _guidance_tokens_ref(x_tok, y_tok, P, scale):
    hx = jnp.maximum(x_tok @ P["w1x"] + P["b1x"], 0.0)
    xe = hx @ P["w2x"] + P["b2x"]
    hy = jnp.maximum(y_tok @ P["w1y"] + P["b1y"], 0.0)
    ye = hy @ P["w2y"] + P["b2y"]
    q = xe @ P["wq"]; k = ye @ P["wk"]; v = ye @ P["wv"]
    a = jax.nn.softmax(jnp.einsum("gnd,gmd->gnm", q, k) * scale, axis=-1)
    xg = xe + jnp.einsum("gnm,gmd->gnd", a, v)
    he = jnp.maximum(xg @ P["w1e"] + P["b1e"], 0.0)
    return he @ P["w2e"] + P["b2e"]


def gla_forward_ref(x, y, gparams, lparams, patch_size):
    B, C, H, W = x.shape
    p = patch_size
    Hp, Wp = H // p, W // p
    E = gparams["wq"].shape[0]
    scale = 1.0 / math.sqrt(E)

    xp = jnp.max(x.reshape(B, C, Hp, p, Wp, p), axis=(3, 5))
    yp = jnp.max(y.reshape(B, C, Hp, p, Wp, p), axis=(3, 5))
    x_tok = xp.reshape(B, C, Hp * Wp).transpose(0, 2, 1)
    y_tok = yp.reshape(B, C, Hp * Wp).transpose(0, 2, 1)
    g_tok = _guidance_tokens_ref(x_tok, y_tok, gparams, scale)
    xg = g_tok.transpose(0, 2, 1).reshape(B, C, Hp, Wp)
    xg = jnp.repeat(jnp.repeat(xg, p, axis=2), p, axis=3)

    def win(t):
        return (t.reshape(B, C, Hp, p, Wp, p)
                 .transpose(0, 2, 4, 3, 5, 1)
                 .reshape(-1, p * p, C))
    l_tok = _guidance_tokens_ref(win(x), win(y), lparams, scale)
    xl = (l_tok.reshape(B, Hp, Wp, p, p, C)
               .transpose(0, 5, 1, 3, 2, 4)
               .reshape(B, C, H, W))
    return xg + xl


if __name__ == "__main__":
    B, C, H, W = 2, 4, 16, 16
    patch_size = 4
    embed_dim = 32

    key = jax.random.PRNGKey(0)
    kx, ky, kg, kl = jax.random.split(key, 4)
    x = jax.random.normal(kx, (B, C, H, W), jnp.float32)
    y = jax.random.normal(ky, (B, C, H, W), jnp.float32)

    gparams = make_guidance_params(kg, C, embed_dim)
    lparams = make_guidance_params(kl, C, embed_dim)

    fwd = jax.jit(gla_forward, static_argnames=("patch_size",))
    out = jax.block_until_ready(fwd(x, y, gparams, lparams,
                                    patch_size=patch_size))

    ref = gla_forward_ref(x, y, gparams, lparams, patch_size)
    assert out.shape == (B, C, H, W)
    # Tolerance slightly loosened vs pure-f32: the softmax denominator uses the
    # EUP approximate reciprocal inside the kernel.
    np.testing.assert_allclose(np.asarray(out), np.asarray(ref),
                               rtol=2e-3, atol=2e-3)
    print("KERNEL_OK")
</pallas_src>

<mosaic_0001>
module attributes {stable_mosaic.version = 11 : i64} {
  func.func @_gla_block_kernel(%arg0: i32, %arg1: memref<5xi32, #tpu.memory_space<smem>>, %arg2: memref<4x128xf32, #tpu.memory_space<vmem>>, %arg3: memref<4x128xf32, #tpu.memory_space<vmem>>, %arg4: memref<1x128x128xf32, #tpu.memory_space<vmem>>, %arg5: memref<1x104x4xf32, #tpu.memory_space<vmem>>, %arg6: memref<1x68x32xf32, #tpu.memory_space<vmem>>, %arg7: memref<1x140x1xf32, #tpu.memory_space<vmem>>, %arg8: memref<4x128xf32, #tpu.memory_space<vmem>>) attributes {dimension_semantics = [#tpu.dimension_semantics<parallel>], iteration_bounds = array<i64: 5>, scalar_prefetch = 1 : i64, scratch_operands = 0 : i64, tpu.core_type = #tpu.core_type<tc>, window_params = [{transform_indices = @transform_0, window_bounds = array<i64: 4, 128>}, {transform_indices = @transform_1, window_bounds = array<i64: 4, 128>}, {transform_indices = @transform_2, window_bounds = array<i64: 1, 128, 128>}, {transform_indices = @transform_3, window_bounds = array<i64: 1, 104, 4>}, {transform_indices = @transform_4, window_bounds = array<i64: 1, 68, 32>}, {transform_indices = @transform_5, window_bounds = array<i64: 1, 140, 1>}, {transform_indices = @transform_6, window_bounds = array<i64: 4, 128>}]} {
    %c0 = arith.constant 0 : index
    %c0_0 = arith.constant 0 : index
    %c0_1 = arith.constant 0 : index
    %0 = vector.load %arg5[%c0, %c0_0, %c0_1] : memref<1x104x4xf32, #tpu.memory_space<vmem>>, vector<1x104x4xf32>
    %1 = vector.shape_cast %0 : vector<1x104x4xf32> to vector<104x4xf32>
    %c0_2 = arith.constant 0 : index
    %c0_3 = arith.constant 0 : index
    %c0_4 = arith.constant 0 : index
    %2 = vector.load %arg6[%c0_2, %c0_3, %c0_4] : memref<1x68x32xf32, #tpu.memory_space<vmem>>, vector<1x68x32xf32>
    %3 = vector.shape_cast %2 : vector<1x68x32xf32> to vector<68x32xf32>
    %c0_5 = arith.constant 0 : index
    %c0_6 = arith.constant 0 : index
    %c0_7 = arith.constant 0 : index
    %4 = vector.load %arg7[%c0_5, %c0_6, %c0_7] : memref<1x140x1xf32, #tpu.memory_space<vmem>>, vector<1x140x1xf32>
    %5 = vector.shape_cast %4 : vector<1x140x1xf32> to vector<140x1xf32>
    %6 = vector.extract_strided_slice %1 {offsets = [0, 0], sizes = [4, 4], strides = [1, 1]} : vector<104x4xf32> to vector<4x4xf32>
    %7 = vector.extract_strided_slice %1 {offsets = [4, 0], sizes = [32, 4], strides = [1, 1]} : vector<104x4xf32> to vector<32x4xf32>
    %8 = vector.extract_strided_slice %1 {offsets = [36, 0], sizes = [4, 4], strides = [1, 1]} : vector<104x4xf32> to vector<4x4xf32>
    %9 = vector.extract_strided_slice %1 {offsets = [40, 0], sizes = [64, 4], strides = [1, 1]} : vector<104x4xf32> to vector<64x4xf32>
    %10 = vector.extract_strided_slice %3 {offsets = [0, 0], sizes = [32, 32], strides = [1, 1]} : vector<68x32xf32> to vector<32x32xf32>
    %11 = vector.extract_strided_slice %3 {offsets = [32, 0], sizes = [32, 32], strides = [1, 1]} : vector<68x32xf32> to vector<32x32xf32>
    %12 = vector.extract_strided_slice %3 {offsets = [64, 0], sizes = [4, 32], strides = [1, 1]} : vector<68x32xf32> to vector<4x32xf32>
    %13 = vector.extract_strided_slice %5 {offsets = [0, 0], sizes = [4, 1], strides = [1, 1]} : vector<140x1xf32> to vector<4x1xf32>
    %14 = vector.extract_strided_slice %5 {offsets = [4, 0], sizes = [32, 1], strides = [1, 1]} : vector<140x1xf32> to vector<32x1xf32>
    %15 = vector.extract_strided_slice %5 {offsets = [36, 0], sizes = [4, 1], strides = [1, 1]} : vector<140x1xf32> to vector<4x1xf32>
    %16 = vector.extract_strided_slice %5 {offsets = [40, 0], sizes = [64, 1], strides = [1, 1]} : vector<140x1xf32> to vector<64x1xf32>
    %17 = vector.extract_strided_slice %5 {offsets = [104, 0], sizes = [32, 1], strides = [1, 1]} : vector<140x1xf32> to vector<32x1xf32>
    %18 = vector.extract_strided_slice %5 {offsets = [136, 0], sizes = [4, 1], strides = [1, 1]} : vector<140x1xf32> to vector<4x1xf32>
    %c0_8 = arith.constant 0 : index
    %c0_9 = arith.constant 0 : index
    %19 = vector.load %arg2[%c0_8, %c0_9] : memref<4x128xf32, #tpu.memory_space<vmem>>, vector<4x128xf32>
    %c0_10 = arith.constant 0 : index
    %c0_11 = arith.constant 0 : index
    %20 = vector.load %arg3[%c0_10, %c0_11] : memref<4x128xf32, #tpu.memory_space<vmem>>, vector<4x128xf32>
    %cst = arith.constant dense<0.000000e+00> : vector<4x128xf32>
    %21 = tpu.matmul %6, %19, %cst {dimension_numbers = #tpu.dot_dimension_numbers<[1], [0], [0], [1], [0, 0, 1, 1], [], []>} : vector<4x4xf32>, vector<4x128xf32>, vector<4x128xf32> -> vector<4x128xf32>
    %22 = vector.broadcast %13 : vector<4x1xf32> to vector<4x128xf32>
    %23 = arith.addf %21, %22 : vector<4x128xf32>
    %cst_12 = arith.constant 0.000000e+00 : f32
    %24 = vector.broadcast %cst_12 : f32 to vector<4x128xf32>
    %25 = arith.maximumf %23, %24 : vector<4x128xf32>
    %cst_13 = arith.constant dense<0.000000e+00> : vector<32x128xf32>
    %26 = tpu.matmul %7, %25, %cst_13 {dimension_numbers = #tpu.dot_dimension_numbers<[1], [0], [0], [1], [0, 0, 1, 1], [], []>} : vector<32x4xf32>, vector<4x128xf32>, vector<32x128xf32> -> vector<32x128xf32>
    %27 = vector.broadcast %14 : vector<32x1xf32> to vector<32x128xf32>
    %28 = arith.addf %26, %27 : vector<32x128xf32>
    %cst_14 = arith.constant dense<0.000000e+00> : vector<4x128xf32>
    %29 = tpu.matmul %8, %20, %cst_14 {dimension_numbers = #tpu.dot_dimension_numbers<[1], [0], [0], [1], [0, 0, 1, 1], [], []>} : vector<4x4xf32>, vector<4x128xf32>, vector<4x128xf32> -> vector<4x128xf32>
    %30 = vector.broadcast %15 : vector<4x1xf32> to vector<4x128xf32>
    %31 = arith.addf %29, %30 : vector<4x128xf32>
    %cst_15 = arith.constant 0.000000e+00 : f32
    %32 = vector.broadcast %cst_15 : f32 to vector<4x128xf32>
    %33 = arith.maximumf %31, %32 : vector<4x128xf32>
    %cst_16 = arith.constant dense<0.000000e+00> : vector<64x128xf32>
    %34 = tpu.matmul %9, %33, %cst_16 {dimension_numbers = #tpu.dot_dimension_numbers<[1], [0], [0], [1], [0, 0, 1, 1], [], []>} : vector<64x4xf32>, vector<4x128xf32>, vector<64x128xf32> -> vector<64x128xf32>
    %35 = vector.broadcast %16 : vector<64x1xf32> to vector<64x128xf32>
    %36 = arith.addf %34, %35 : vector<64x128xf32>
    %37 = vector.extract_strided_slice %36 {offsets = [0, 0], sizes = [32, 128], strides = [1, 1]} : vector<64x128xf32> to vector<32x128xf32>
    %38 = vector.extract_strided_slice %36 {offsets = [32, 0], sizes = [32, 128], strides = [1, 1]} : vector<64x128xf32> to vector<32x128xf32>
    %cst_17 = arith.constant dense<0.000000e+00> : vector<32x128xf32>
    %39 = tpu.matmul %10, %28, %cst_17 {dimension_numbers = #tpu.dot_dimension_numbers<[1], [0], [0], [1], [0, 0, 1, 1], [], []>} : vector<32x32xf32>, vector<32x128xf32>, vector<32x128xf32> -> vector<32x128xf32>
    %cst_18 = arith.constant dense<0.000000e+00> : vector<128x128xf32>
    %40 = tpu.matmul %37, %39, %cst_18 {dimension_numbers = #tpu.dot_dimension_numbers<[0], [0], [1], [1], [0, 1, 1, 1], [], []>} : vector<32x128xf32>, vector<32x128xf32>, vector<128x128xf32> -> vector<128x128xf32>
    %c0_19 = arith.constant 0 : index
    %c0_20 = arith.constant 0 : index
    %c0_21 = arith.constant 0 : index
    %41 = vector.load %arg4[%c0_19, %c0_20, %c0_21] : memref<1x128x128xf32, #tpu.memory_space<vmem>>, vector<1x128x128xf32>
    %42 = vector.shape_cast %41 : vector<1x128x128xf32> to vector<128x128xf32>
    %43 = arith.addf %40, %42 : vector<128x128xf32>
    %cst_22 = arith.constant dense<0xFF800000> : vector<128xf32>
    %44 = vector.multi_reduction <maximumf>, %43, %cst_22 [0] : vector<128x128xf32> to vector<128xf32>
    %45 = vector.shape_cast %44 : vector<128xf32> to vector<1x128xf32>
    %46 = vector.broadcast %45 : vector<1x128xf32> to vector<128x128xf32>
    %47 = arith.subf %43, %46 : vector<128x128xf32>
    %48 = math.exp %47 : vector<128x128xf32>
    %cst_23 = arith.constant dense<0.000000e+00> : vector<128xf32>
    %49 = vector.multi_reduction <add>, %48, %cst_23 [0] : vector<128x128xf32> to vector<128xf32>
    %50 = vector.shape_cast %49 : vector<128xf32> to vector<1x128xf32>
    %cst_24 = arith.constant dense<0.000000e+00> : vector<32x128xf32>
    %51 = tpu.matmul %38, %48, %cst_24 {dimension_numbers = #tpu.dot_dimension_numbers<[1], [0], [0], [1], [0, 0, 1, 1], [], []>} : vector<32x128xf32>, vector<128x128xf32>, vector<32x128xf32> -> vector<32x128xf32>
    %52 = tpu.reciprocal %50 {approx = true} : vector<1x128xf32> -> vector<1x128xf32>
    %53 = vector.broadcast %52 : vector<1x128xf32> to vector<32x128xf32>
    %54 = arith.mulf %51, %53 : vector<32x128xf32>
    %55 = arith.addf %28, %54 : vector<32x128xf32>
    %cst_25 = arith.constant dense<0.000000e+00> : vector<32x128xf32>
    %56 = tpu.matmul %11, %55, %cst_25 {dimension_numbers = #tpu.dot_dimension_numbers<[1], [0], [0], [1], [0, 0, 1, 1], [], []>} : vector<32x32xf32>, vector<32x128xf32>, vector<32x128xf32> -> vector<32x128xf32>
    %57 = vector.broadcast %17 : vector<32x1xf32> to vector<32x128xf32>
    %58 = arith.addf %56, %57 : vector<32x128xf32>
    %cst_26 = arith.constant 0.000000e+00 : f32
    %59 = vector.broadcast %cst_26 : f32 to vector<32x128xf32>
    %60 = arith.maximumf %58, %59 : vector<32x128xf32>
    %cst_27 = arith.constant dense<0.000000e+00> : vector<4x128xf32>
    %61 = tpu.matmul %12, %60, %cst_27 {dimension_numbers = #tpu.dot_dimension_numbers<[1], [0], [0], [1], [0, 0, 1, 1], [], []>} : vector<4x32xf32>, vector<32x128xf32>, vector<4x128xf32> -> vector<4x128xf32>
    %62 = vector.broadcast %18 : vector<4x1xf32> to vector<4x128xf32>
    %63 = arith.addf %61, %62 : vector<4x128xf32>
    %c0_28 = arith.constant 0 : index
    %c0_29 = arith.constant 0 : index
    %64 = vector.load %arg8[%c0_28, %c0_29] : memref<4x128xf32, #tpu.memory_space<vmem>>, vector<4x128xf32>
    tpu.vector_store %arg8[%c0_28, %c0_29], %63 {strides = array<i32>} : memref<4x128xf32, #tpu.memory_space<vmem>>, vector<4x128xf32>,
    return
  }
  func.func @transform_0(%arg0: i32, %arg1: memref<5xi32, #tpu.memory_space<smem>>) -> (i32, i32) {
    %c0_i32 = arith.constant 0 : i32
    %c0_i32_0 = arith.constant 0 : i32
    return %c0_i32, %arg0 : i32, i32
  }
  func.func @transform_1(%arg0: i32, %arg1: memref<5xi32, #tpu.memory_space<smem>>) -> (i32, i32) {
    %c0_i32 = arith.constant 0 : i32
    %c0_i32_0 = arith.constant 0 : i32
    return %c0_i32, %arg0 : i32, i32
  }
  func.func @transform_2(%arg0: i32, %arg1: memref<5xi32, #tpu.memory_space<smem>>) -> (i32, i32, i32) {
    %0 = arith.index_cast %arg0 : i32 to index
    %1 = memref.load %arg1[%0] : memref<5xi32, #tpu.memory_space<smem>>
    %c0_i32 = arith.constant 0 : i32
    %c0_i32_0 = arith.constant 0 : i32
    %c0_i32_1 = arith.constant 0 : i32
    return %1, %c0_i32, %c0_i32_0 : i32, i32, i32
  }
  func.func @transform_3(%arg0: i32, %arg1: memref<5xi32, #tpu.memory_space<smem>>) -> (i32, i32, i32) {
    %0 = arith.index_cast %arg0 : i32 to index
    %1 = memref.load %arg1[%0] : memref<5xi32, #tpu.memory_space<smem>>
    %c0_i32 = arith.constant 0 : i32
    %c0_i32_0 = arith.constant 0 : i32
    %c0_i32_1 = arith.constant 0 : i32
    return %1, %c0_i32, %c0_i32_0 : i32, i32, i32
  }
  func.func @transform_4(%arg0: i32, %arg1: memref<5xi32, #tpu.memory_space<smem>>) -> (i32, i32, i32) {
    %0 = arith.index_cast %arg0 : i32 to index
    %1 = memref.load %arg1[%0] : memref<5xi32, #tpu.memory_space<smem>>
    %c0_i32 = arith.constant 0 : i32
    %c0_i32_0 = arith.constant 0 : i32
    %c0_i32_1 = arith.constant 0 : i32
    return %1, %c0_i32, %c0_i32_0 : i32, i32, i32
  }
  func.func @transform_5(%arg0: i32, %arg1: memref<5xi32, #tpu.memory_space<smem>>) -> (i32, i32, i32) {
    %0 = arith.index_cast %arg0 : i32 to index
    %1 = memref.load %arg1[%0] : memref<5xi32, #tpu.memory_space<smem>>
    %c0_i32 = arith.constant 0 : i32
    %c0_i32_0 = arith.constant 0 : i32
    %c0_i32_1 = arith.constant 0 : i32
    return %1, %c0_i32, %c0_i32_0 : i32, i32, i32
  }
  func.func @transform_6(%arg0: i32, %arg1: memref<5xi32, #tpu.memory_space<smem>>) -> (i32, i32) {
    %c0_i32 = arith.constant 0 : i32
    %c0_i32_0 = arith.constant 0 : i32
    return %c0_i32, %arg0 : i32, i32
  }
}

</mosaic_0001>

<bundles_post_ra>
// kernel: gla_forward.1
= control target key start
LH: loop header
LB: loop body
LE: loop exit
PB: predicated region body
PF: predicated region fallthrough
CT: control target
= control target key end

     0   :  { %s2433_s0 = inlined_call_operand.vmem [shape: s32[5], index: 0, kind: input, shape index: {}]   ;;  %s2434_s1 = inlined_call_operand.vmem [shape: f32[4,640], index: 1, kind: input, shape index: {}]   ;;  %s2435_s2 = inlined_call_operand.vmem [shape: f32[4,640], index: 2, kind: input, shape index: {}]   ;;  %s2436_s3 = inlined_call_operand.vmem [shape: f32[2,128,128], index: 3, kind: input, shape index: {}]   ;;  %s2437_s4 = inlined_call_operand.vmem [shape: f32[2,104,4], index: 4, kind: input, shape index: {}]   ;;  %s2438_s5 = inlined_call_operand.vmem [shape: f32[2,68,32], index: 5, kind: input, shape index: {}]   ;;  %s2439_s6 = inlined_call_operand.vmem [shape: f32[2,140,1], index: 6, kind: input, shape index: {}]   ;;  %s2440_s7 = inlined_call_operand.vmem [shape: f32[4,640], index: 7, kind: output, shape index: {}]  }
   0x1   :  { %s12_s26 = sshll.u32 %s2433_s0, 4  ;;  %s13_s26 = int_to_ptr.vmem [resolvable:$true] %s12_s26 }
   0x2   :  { %s2121_s27 = scalar_lea.vmem %s13_s26, 16  ;;  %p2126_p1 = scmp.lt.s32.totalorder %s13_s26, %s13_s26 }
   0x3   :  { %p2122_p0 = scmp.ne.s32.totalorder %s13_s26, %s2121_s27  ;;  %p2127_p2 = scmp.lt.s32.totalorder %s2121_s27, %s2121_s27 }
   0x5   :  { %p2128_p3 = por %p2127_p2, %p2126_p1 }
   0x7   :  { %p2129_p4 = pnand %p2128_p3, %p2122_p0 }
   0x9   :  { %2132 = shalt.err (!%p2129_p4)  }
   0xa   :  { %s2143_s28 = smov [#allocation3]  }
   0xb   :  { %15 = dma.vmem_to_smem %s13_s26, 16, %s2143_s28, [#allocation2] }
   0xc   :  { %2137 = dma.done.wait [#allocation2], 16 }
   0xd   :  { %2138 = vsyncadd [#allocation2], 4294967280 }
   0xe   :  { %17 = sfence }
   0xf   :  { %s2191_s29 = smov 0  }
  0x10 LB: > { %s2197_s0 = sadd.s32 4294967295, %s2141_s29   ;;  %p1732_p5 = scmp.ge.s32.totalorder %s2141_s29, 1  ;;  %s2141_s29 = sphi %s2191_s29, %s23_s29  }
  0x11   : > { %p283_p6 = scmp.lt.s32.totalorder %s2141_s29, 6 }
  0x13   : > { %p284_p7 = pnand %p1732_p5, %p283_p6 }
  0x14   : > { %p339_p8 = scmp.lt.s32.totalorder (!%p284_p7), %s2197_s0, 4  ;;  %s354_s30 = sld [smem:[#allocation3 + %s2197_s0]] (!%p284_p7)  ;;  %v2144_v0 = vmov (!%p284_p7), 0.0   ;;  %vm2145_vm0 = vmmov (!%p284_p7), 0   ;;  %v2146_v1 = vmov (!%p284_p7), 0   ;;  %vm430_vm1 = vcmask (!%p284_p7), 1043456  }
  0x15   : > { %287 = sbr.rel (%p284_p7) target bundleno = 1681 (0x691), region = 44  ;;  %1866 = vmatprep.subr.mxu0 (!%p284_p7), %v2144_v0  ;;  %1868 = vmatprep.mubr.msk.f32.mxu0 (!%p284_p7), %vm2145_vm0, %v2144_v0  ;;  %s368_s8 = sld [smem:[#allocation3 + %s2197_s0]] (!%p284_p7)  ;;  %vm426_vm2 = vcmask (!%p284_p7), 31744   ;;  %vm892_vm3 = vcmask (!%p284_p7), 261120  }
  0x16   : > { %2085 = vset.pattern.permute.xlu0 (!%p284_p7), %v2146_v1  ;;  %2086 = vset.pattern.permute.xlu1 (!%p284_p7), %v2146_v1  ;;  %s361_s25 = sld [smem:[#allocation3 + %s2197_s0]] (!%p284_p7) }
  0x1a   : > { %p355_p9 = scmp.lt.s32.totalorder (!%p284_p7), %s354_s30, 1 }
  0x1b   : > { %p369_p10 = scmp.lt.s32.totalorder (!%p284_p7), %s368_s8, 1 }
  0x1c   : > { %s340_s9 = scalar_select %p339_p8, %s2197_s0, 4 }
  0x1d   : > { %s2442_s30 = smov (!%p355_p9, %s354_s30), 1  ;;  %s2444_s8 = smov (!%p369_p10, %s368_s8), 1 }
  0x1e   : > { %s2208_s10 = sshll.u32 %s340_s9, 2  ;;  %s2069_s17 = smul.u32 104, %s2442_s30 }
  0x1f   : > { %s342_s13 = scalar_lea.vmem %s2434_s1, %s2208_s10  ;;  %s346_s16 = scalar_lea.vmem %s2435_s2, %s2208_s10 }
  0x20   : > { %v419_v2 = vld [vmem:[%s342_s13] sm:$0xf]  ;;  %s2071_s18 = smul.u32 144, %s2444_s8  ;;  %s2223_s21 = scalar_lea.vmem %s2437_s4, %s2069_s17 }
  0x21   : > { %1867 = vmatpush3.msk.msra.mxu0 %vm430_vm1, %v419_v2  ;;  %v420_v3 = vld [vmem:[%s346_s16] sm:$0xf]  ;;  %v380_v24 = vld [vmem:[%s2223_s21 + $0x8] sm:$0xff]  ;;  %v381_v31 = vld [vmem:[%s2223_s21 + $0x10] sm:$0xff]  ;;  %p362_p11 = scmp.lt.s32.totalorder %s361_s25, 1  ;;  %s347_s8 = sld [smem:[#allocation3 + %s2197_s0]] }
  0x22   : > { %1879 = vmatprep.subr.mxu0 %v2144_v0  ;;  %v379_v4 = vld [vmem:[%s2223_s21] sm:$0xff]  ;;  %s2232_s24 = scalar_lea.vmem %s2439_s6, %s2071_s18  ;;  %v526_v25 = vrot.slane %v380_v24, 4  ;;  %v384_v27 = vld [vmem:[%s2223_s21 + $0x28] sm:$0xff]  ;;  %v382_v32 = vld [vmem:[%s2223_s21 + $0x18] sm:$0xff]  ;;  %v528_v34 = vrot.slane %v381_v31, 4  ;;  %s378_s15 = scalar_lea.vmem %s2440_s7, %s2208_s10 }
  0x23   : > { %v2227_v5 = vld [vmem:[%s2223_s21 + $0x20] sm:$0xff]  ;;  %1869 = vmatmul.mubr.msk.f32.vlgmr.msra.gmra.mrb[0].mxu0 %vm426_vm2, %v379_v4  ;;  %v402_v9 = vld [vmem:[%s2232_s24 + $0x8] sm:$0xff]  ;;  %v403_v10 = vld [vmem:[%s2232_s24 + $0x10] sm:$0xff]  ;;  %v525_v23 = vrot.slane %v379_v4, 4  ;;  %v530_v37 = vrot.slane %v382_v32, 4  ;;  %s2446_s25 = smov (!%p362_p11, %s361_s25), 1 }
  0x24   : > { %v532_v6 = vrot.slane %v2227_v5, 4  ;;  %v401_v7 = vld [vmem:[%s2232_s24] sm:$0xff]  ;;  %1880 = vmatpush3.msk.msra.mxu0 %vm430_vm1, %v420_v3  ;;  %1881 = vmatprep.mubr.msk.f32.mxu0 %vm2145_vm0, %v2144_v0  ;;  %v404_v11 = vld [vmem:[%s2232_s24 + $0x18] sm:$0xff]  ;;  %v407_v12 = vld [vmem:[%s2232_s24 + $0x30] sm:$0xff]  ;;  %v529_v42 = vsel %vm430_vm1, %v526_v25, %v528_v34  ;;  %s2070_s26 = smul.u32 72, %s2446_s25 }
  0x25   : > { %423 = vperm.xlu0 %2085, %v401_v7   ;;  %v405_v8 = vld [vmem:[%s2232_s24 + $0x20] sm:$0xff]  ;;  %507 = vperm.xlu1 %2086, %v402_v9   ;;  %v410_v14 = vld [vmem:[%s2232_s24 + $0x48] sm:$0xff]  ;;  %v411_v15 = vld [vmem:[%s2232_s24 + $0x50] sm:$0xff]  ;;  %v527_v26 = vsel %vm430_vm1, %v525_v23, %v526_v25  ;;  %v531_v44 = vsel %vm430_vm1, %v528_v34, %v530_v37 }
  0x26   : > { %v409_v13 = vld [vmem:[%s2232_s24 + $0x40] sm:$0xff]  ;;  %v412_v16 = vld [vmem:[%s2232_s24 + $0x58] sm:$0xff]  ;;  %v414_v18 = vld [vmem:[%s2232_s24 + $0x68] sm:$0xff]  ;;  %1873 = vmatprep.mubr.msk.f32.mxu1 %vm426_vm2, %v527_v26  ;;  %v533_v47 = vsel %vm430_vm1, %v530_v37, %v532_v6  ;;  %s2297_s30 = scalar_lea.vmem %s2438_s5, %s2070_s26 }
  0x27   : > { %1882 = vmatmul.mubr.msk.f32.vlgmr.msra.gmra.mrb[2].mxu0 %vm426_vm2, %v532_v6  ;;  %v413_v17 = vld [vmem:[%s2232_s24 + $0x60] sm:$0xff]  ;;  %v415_v19 = vld [vmem:[%s2232_s24 + $0x70] sm:$0xff]  ;;  %v416_v20 = vld [vmem:[%s2232_s24 + $0x78] sm:$0xff]  ;;  %p348_p12 = scmp.lt.s32.totalorder %s347_s8, 1 }
  0x28   : > { %v417_v21 = vld [vmem:[%s2232_s24 + $0x80] sm:$0xff]  ;;  %v418_v22 = vld [vmem:[%s2232_s24 + $0x88] sm:$0xf]  ;;  %1886 = vmatprep.mubr.msk.f32.mxu0 %vm426_vm2, %v384_v27  ;;  %v408_v29 = vld [vmem:[%s2232_s24 + $0x38] sm:$0xff] }
  0x29   : > { %519 = vperm.xlu0 %2085, %v405_v8   ;;  %511 = vperm.xlu1 %2086, %v403_v10   ;;  %v406_v28 = vld [vmem:[%s2232_s24 + $0x28] sm:$0xff]  ;;  %v385_v48 = vld [vmem:[%s2223_s21 + $0x30] sm:$0xff]  ;;  %v386_v49 = vld [vmem:[%s2223_s21 + $0x38] sm:$0xff]  ;;  %s2448_s8 = smov (!%p348_p12, %s347_s8), 1 }
  0x2a   : > { %v387_v50 = vld [vmem:[%s2223_s21 + $0x40] sm:$0xff]  ;;  %v388_v51 = vld [vmem:[%s2223_s21 + $0x48] sm:$0xff]  ;;  %v389_v52 = vld [vmem:[%s2223_s21 + $0x50] sm:$0xff]  ;;  %s1786_s9 = sshll.u32 %s2448_s8, 7 }
  0x2b   : > { %v390_v53 = vld [vmem:[%s2223_s21 + $0x58] sm:$0xff]  ;;  %v391_v54 = vld [vmem:[%s2223_s21 + $0x60] sm:$0xff]  ;;  %v393_v23 = vld [vmem:[%s2297_s30 + $0x8] sm:$0xff]  ;;  %s2351_s13 = scalar_lea.vmem %s2436_s3, %s1786_s9 }
  0x2c   : > { %v392_v55 = vld [vmem:[%s2297_s30] sm:$0xff]  ;;  %v394_v26 = vld [vmem:[%s2297_s30 + $0x10] sm:$0xff]  ;;  %v395_v31 = vld [vmem:[%s2297_s30 + $0x18] sm:$0xff] }
  0x2d   : > { %515 = vperm.xlu0 %2085, %v404_v11   ;;  %722 = vperm.xlu1 %2086, %v406_v28  }
  0x31   : > { %727 = vperm.xlu0 %2085, %v407_v12   ;;  %732 = vperm.xlu1 %2086, %v408_v29  }
  0x35   : > { %737 = vperm.xlu0 %2085, %v409_v13  }
  0x39   : > { %742 = vperm.xlu0 %2085, %v410_v14  }
  0x3d   : > { %747 = vperm.xlu0 %2085, %v411_v15  }
  0x41   : > { %752 = vperm.xlu0 %2085, %v412_v16  }
  0x45   : > { %757 = vperm.xlu0 %2085, %v413_v17  }
  0x49   : > { %1417 = vperm.xlu0 %2085, %v414_v18  }
  0x4d   : > { %1422 = vperm.xlu0 %2085, %v415_v19  }
  0x51   : > { %1427 = vperm.xlu0 %2085, %v416_v20  }
  0x55   : > { %1432 = vperm.xlu0 %2085, %v417_v21  }
  0x59   : > { %1538 = vperm.xlu0 %2085, %v418_v22  }
  0xa4   : > { %v424_v30 = vpop.permute.xlu0 %423  ;;  %v508_v56 = vpop.permute.xlu1 %507 }
  0xa5   : > { %v534_v59 = vrot.slane %v424_v30, 4  ;;  %v535_v60 = vrot.slane %v508_v56, 4 }
  0xa7   : > { %v536_v4 = vsel %vm430_vm1, %v534_v59, %v535_v60 }
  0xa8   : > { %v520_v38 = vpop.permute.xlu0 %519  ;;  %v512_v58 = vpop.permute.xlu1 %511 }
  0xa9   : > { %v541_v39 = vrot.slane %v520_v38, 4  ;;  %v537_v61 = vrot.slane %v512_v58, 4 }
  0xab   : > { %v538_v1 = vsel %vm430_vm1, %v535_v60, %v537_v61  ;;  %v991_v60 = vld [vmem:[%s2351_s13 + $0x8] sm:$0xff] }
  0xac   : > { %v516_v57 = vpop.permute.xlu0 %515  ;;  %v723_v7 = vpop.permute.xlu1 %722 }
  0xad   : > { %v539_v62 = vrot.slane %v516_v57, 4 }
  0xaf   : > { %v542_v9 = vsel %vm430_vm1, %v539_v62, %v541_v39  ;;  %v540_v13 = vsel %vm430_vm1, %v537_v61, %v539_v62  ;;  %v995_v61 = vld [vmem:[%s2351_s13 + $0x28] sm:$0xff]  ;;  %v990_v62 = vld [vmem:[%s2351_s13] sm:$0xff] }
  0xb0   : > { %v728_v63 = vpop.permute.xlu0 %727  ;;  %v733_v27 = vpop.permute.xlu1 %732 }
  0xb4   : > { %v738_v16 = vpop.permute.xlu0 %737 }
  0xb8   : > { %v743_v24 = vpop.permute.xlu0 %742 }
  0xf6   : > { %v500_v33 = vpop.f32.mrb[0].mxu0 }
  0xf7   : > { %v501_v35 = vadd.f32 %v500_v33, %v424_v30  ;;  %v1870_v36 = vpop.f32.mrb[1].mxu0 }
  0xf9   : > { %v504_v40 = vmax.f32 %v501_v35, 0.0 }
  0xfa   : > { %v715_v41 = vpop.f32.mrb[2].mxu0 }
  0xfb   : > { %v716_v43 = vadd.f32 %v715_v41, %v541_v39  ;;  %1871 = vmatprep.subr.msk.mxu1 %vm430_vm1, %v504_v40  ;;  %v1883_v45 = vpop.f32.mrb[3].mxu0 }
  0xfc   : > { %1872 = vmatpush3.msk.msra.mxu1 %vm430_vm1, %v504_v40 }
  0xfd   : > { %v719_v46 = vmax.f32 %v716_v43, 0.0  ;;  %1874 = vmatmul.mubr.msk.f32.vlgmr.msra.gmra.mrb[0].mxu1 %vm426_vm2, %v529_v42 }
  0xfe   : > { %1876 = vmatprep.mubr.msk.f32.mxu1 %vm426_vm2, %v531_v44 }
  0xff   : > { %1884 = vmatprep.subr.msk.mxu0 %vm430_vm1, %v719_v46 }
 0x100   : > { %1885 = vmatpush3.msk.msra.mxu0 %vm430_vm1, %v719_v46 }
 0x101   : > { %1877 = vmatmul.mubr.msk.f32.gmra.mrb[2].mxu1 %vm426_vm2, %v533_v47  ;;  %1887 = vmatmul.mubr.msk.f32.vlgmr.msra.gmra.mrb[4].mxu0 %vm426_vm2, %v385_v48 }
 0x102   : > { %1889 = vmatprep.mubr.msk.f32.mxu0 %vm426_vm2, %v386_v49  ;;  %1906 = vmatprep.mubr.msk.f32.mxu1 %vm892_vm3, %v392_v55 }
 0x105   : > { %1890 = vmatmul.mubr.msk.f32.gmra.mrb[6].mxu0 %vm426_vm2, %v387_v50 }
 0x106   : > { %1892 = vmatprep.mubr.msk.f32.mxu0 %vm426_vm2, %v388_v51 }
 0x109   : > { %1893 = vmatmul.mubr.msk.f32.gmra.mrb[8].mxu0 %vm426_vm2, %v389_v52 }
 0x10a   : > { %1895 = vmatprep.mubr.msk.f32.mxu0 %vm426_vm2, %v390_v53 }
 0x10d   : > { %1896 = vmatmul.mubr.msk.f32.gmra.mrb[10].mxu0 %vm426_vm2, %v391_v54 }
 0x1d0   : > { %v1875_v2 = vpop.f32.mrb[0].mxu1 }
 0x1d1   : > { %v2302_v3 = vadd.f32 %v1875_v2, %v538_v1  ;;  %v624_v5 = vpop.f32.mrb[1].mxu1 }
 0x1d2   : > { %v2305_v6 = vadd.f32 %v624_v5, %v536_v4 }
 0x1d4   : > { %v2007_v8 = vpack.c.bf16 %v2302_v3, %v2305_v6  ;;  %v1878_v10 = vpop.f32.mrb[2].mxu1  ;;  %v1888_v11 = vpop.f32.mrb[4].mxu0 }
 0x1d5   : > { %v2310_v12 = vadd.f32 %v1878_v10, %v542_v9  ;;  %v634_v14 = vpop.f32.mrb[3].mxu1  ;;  %v853_v15 = vpop.f32.mrb[5].mxu0  ;;  %v859_v22 = vadd.f32 %v1888_v11, %v728_v63  ;;  %v994_v63 = vld [vmem:[%s2351_s13 + $0x20] sm:$0xff]  ;;  %v997_v10 = vld [vmem:[%s2351_s13 + $0x38] sm:$0xff]  ;;  %v992_v11 = vld [vmem:[%s2351_s13 + $0x10] sm:$0xff] }
 0x1d6   : > { %v2313_v17 = vadd.f32 %v634_v14, %v540_v13  ;;  %v854_v18 = vadd.f32 %v853_v15, %v723_v7  ;;  %2008 = vmatprep.subr.bf16.mxu1 %v2007_v8  ;;  %v996_v14 = vld [vmem:[%s2351_s13 + $0x30] sm:$0xff] }
 0x1d7   : > { %2010 = vmatpush3.bf16.msra.mxu1 %v2007_v8  ;;  %v993_v8 = vld [vmem:[%s2351_s13 + $0x18] sm:$0xff] }
 0x1d8   : > { %v2011_v19 = vpack.c.bf16 %v2310_v12, %v2313_v17  ;;  %v1891_v20 = vpop.f32.mrb[6].mxu0  ;;  %1006 = vxpose.xlu1.b32.start [1/4] (short) %v854_v18, 128 }
 0x1d9   : > { %v863_v21 = vpop.f32.mrb[7].mxu0  ;;  %v869_v34 = vadd.f32 %v1891_v20, %v738_v16 }
 0x1da   : > { %2012 = vmatprep.subr.bf16.mxu1 %v2011_v19  ;;  %v864_v29 = vadd.f32 %v863_v21, %v733_v27 }
 0x1db   : > { %2014 = vmatpush3.bf16.msra.mxu1 %v2011_v19 }
 0x1dc   : > { %v2318_v25 = vpop.f32.mrb[8].mxu0  ;;  %1007 = vxpose.xlu1.b32.cont [2/4] (short) %v859_v22, 128 }
 0x1dd   : > { %v873_v28 = vpop.f32.mrb[9].mxu0 }
 0x1de   : > { %v874_v30 = vadd.f32 %v873_v28, %v743_v24  ;;  %1907 = vmatmul.mubr.msk.f32.vlgmr.msra.gmra.mrb[4].mxu1 %vm892_vm3, %v393_v23  ;;  %v999_v23 = vld [vmem:[%s2351_s13 + $0x48] sm:$0xff] }
 0x1df   : > { %1909 = vmatprep.mubr.msk.f32.mxu1 %vm892_vm3, %v394_v26  ;;  %v998_v26 = vld [vmem:[%s2351_s13 + $0x40] sm:$0xff] }
 0x1e0   : > { %v2324_v32 = vpop.f32.mrb[10].mxu0  ;;  %1976 = vmatprep.mubr.f32.mxu0 %v874_v30  ;;  %1008 = vxpose.xlu1.b32.cont [3/4] (short) %v864_v29, 128 }
 0x1e1   : > { %v2326_v33 = vpop.f32.mrb[11].mxu0 }
 0x1e2   : > { %1910 = vmatmul.mubr.msk.f32.gmra.mrb[6].mxu1 %vm892_vm3, %v395_v31 }
 0x1e4   : > { %1009 = vxpose.xlu1.b32.end [4/4] (short) %v869_v34, 128  ;;  %v1001_v34 = vld [vmem:[%s2351_s13 + $0x58] sm:$0xff] }
 0x258   : > { %v1022_v35 = vpop.trf.xlu1 }
 0x259   : > { %1920 = vmatprep.mubr.msk.f32.mxu1 %vm892_vm3, %v1022_v35 }
 0x25c   : > { %v1023_v36 = vpop.trf.xlu1 }
 0x260   : > { %v1024_v37 = vpop.trf.xlu1 }
 0x264   : > { %v1025_v38 = vpop.trf.xlu1 }
 0x268   : > { %v1026_v39 = vpop.trf.xlu1 }
 0x26c   : > { %v1027_v40 = vpop.trf.xlu1 }
 0x270   : > { %v1028_v41 = vpop.trf.xlu1 }
 0x274   : > { %v1029_v42 = vpop.trf.xlu1 }
 0x278   : > { %v1030_v43 = vpop.trf.xlu1 }
 0x27c   : > { %v1031_v46 = vpop.trf.xlu1 }
 0x280   : > { %v1032_v51 = vpop.trf.xlu1 }
 0x284   : > { %v1033_v52 = vpop.trf.xlu1 }
 0x288   : > { %v1034_v53 = vpop.trf.xlu1 }
 0x28c   : > { %v1035_v54 = vpop.trf.xlu1 }
 0x290   : > { %v1036_v55 = vpop.trf.xlu1 }
 0x294   : > { %v1037_v56 = vpop.trf.xlu1 }
 0x2b1   : > { %v1908_v44 = vpop.f32.mrb[4].mxu1 }
 0x2b2   : > { %v971_v45 = vpop.f32.mrb[5].mxu1 }
 0x2b3   : > { %v2015_v47 = vpack.c.bf16 %v1908_v44, %v971_v45  ;;  %v1002_v44 = vld [vmem:[%s2351_s13 + $0x60] sm:$0xff] }
 0x2b5   : > { %v1911_v48 = vpop.f32.mrb[6].mxu1  ;;  %2016 = vmatprep.subr.bf16.mxu1 %v2015_v47 }
 0x2b6   : > { %v981_v49 = vpop.f32.mrb[7].mxu1  ;;  %2018 = vmatpush3.bf16.msra.mxu1 %v2015_v47 }
 0x2b7   : > { %v2019_v50 = vpack.c.bf16 %v1911_v48, %v981_v49 }
 0x2b9   : > { %2020 = vmatprep.subr.bf16.mxu1 %v2019_v50 }
 0x2ba   : > { %2022 = vmatpush3.bf16.msra.mxu1 %v2019_v50  ;;  %v1005_v50 = vld [vmem:[%s2351_s13 + $0x78] sm:$0xff] }
 0x2bd   : > { %1921 = vmatmul.mubr.msk.f32.vlgmr.msra.gmra.mrb[8].mxu1 %vm892_vm3, %v1023_v36  ;;  %v1000_v36 = vld [vmem:[%s2351_s13 + $0x50] sm:$0xff] }
 0x2be   : > { %1923 = vmatprep.mubr.msk.f32.mxu1 %vm892_vm3, %v1024_v37 }
 0x2c1   : > { %1924 = vmatmul.mubr.msk.f32.gmra.mrb[10].mxu1 %vm892_vm3, %v1025_v38 }
 0x2c2   : > { %1926 = vmatprep.mubr.msk.f32.mxu1 %vm892_vm3, %v1026_v39 }
 0x2c5   : > { %1927 = vmatmul.mubr.msk.f32.gmra.mrb[12].mxu1 %vm892_vm3, %v1027_v40 }
 0x2c6   : > { %1929 = vmatprep.mubr.msk.f32.mxu1 %vm892_vm3, %v1028_v41 }
 0x2c9   : > { %1930 = vmatmul.mubr.msk.f32.gmra.mrb[14].mxu1 %vm892_vm3, %v1029_v42  ;;  %v1003_v42 = vld [vmem:[%s2351_s13 + $0x68] sm:$0xff] }
 0x2ca   : > { %1932 = vmatprep.mubr.msk.f32.mxu1 %vm892_vm3, %v1030_v43 }
 0x2cd   : > { %1933 = vmatmul.mubr.msk.f32.gmra.mrb[16].mxu1 %vm892_vm3, %v1031_v46 }
 0x2ce   : > { %1935 = vmatprep.mubr.msk.f32.mxu1 %vm892_vm3, %v1032_v51 }
 0x2d1   : > { %1936 = vmatmul.mubr.msk.f32.gmra.mrb[18].mxu1 %vm892_vm3, %v1033_v52  ;;  %v1004_v52 = vld [vmem:[%s2351_s13 + $0x70] sm:$0xff] }
 0x2d2   : > { %1938 = vmatprep.mubr.msk.f32.mxu1 %vm892_vm3, %v1034_v53 }
 0x2d5   : > { %1939 = vmatmul.mubr.msk.f32.gmra.mrb[20].mxu1 %vm892_vm3, %v1035_v54 }
 0x2d6   : > { %1941 = vmatprep.mubr.msk.f32.mxu1 %vm892_vm3, %v1036_v55 }
 0x2d9   : > { %1942 = vmatmul.mubr.msk.f32.gmra.mrb[22].mxu1 %vm892_vm3, %v1037_v56 }
 0x2da   : > { %2004 = vmatprep.mubr.msk.f32.mxu1 %vm2145_vm0, %v2144_v0 }
 0x390   : > { %v1922_v57 = vpop.f32.mrb[8].mxu1 }
 0x391   : > { %v1152_v58 = vpop.f32.mrb[9].mxu1  ;;  %v2357_v2 = vadd.f32 %v1922_v57, %v991_v60 }
 0x392   : > { %v2361_v7 = vadd.f32 %v1152_v58, %v990_v62 }
 0x394   : > { %v1925_v59 = vpop.f32.mrb[10].mxu1 }
 0x395   : > { %v1162_v0 = vpop.f32.mrb[11].mxu1  ;;  %v2373_v18 = vadd.f32 %v1925_v59, %v993_v8 }
 0x396   : > { %v1163_v21 = vadd.f32 %v1162_v0, %v992_v11 }
 0x398   : > { %v1928_v1 = vpop.f32.mrb[12].mxu1 }
 0x399   : > { %v2359_v4 = vadd.f32 %v1928_v1, %v995_v61  ;;  %v1172_v5 = vpop.f32.mrb[13].mxu1 }
 0x39a   : > { %v2364_v9 = vadd.f32 %v1172_v5, %v994_v63 }
 0x39b   : > { %v1232_v13 = vmax.f32 %v2357_v2, %v2359_v4 }
 0x39c   : > { %v1231_v15 = vmax.f32 %v2361_v7, %v2364_v9  ;;  %v1931_v16 = vpop.f32.mrb[14].mxu1 }
 0x39d   : > { %v2375_v19 = vadd.f32 %v1931_v16, %v997_v10  ;;  %v1182_v20 = vpop.f32.mrb[15].mxu1 }
 0x39e   : > { %v2377_v22 = vadd.f32 %v1182_v20, %v996_v14 }
 0x39f   : > { %v1234_v24 = vmax.f32 %v2373_v18, %v2375_v19 }
 0x3a0   : > { %v1233_v27 = vmax.f32 %v1163_v21, %v2377_v22  ;;  %v1934_v28 = vpop.f32.mrb[16].mxu1 }
 0x3a1   : > { %v2384_v29 = vadd.f32 %v1934_v28, %v999_v23  ;;  %v1192_v30 = vpop.f32.mrb[17].mxu1 }
 0x3a2   : > { %v2386_v31 = vadd.f32 %v1192_v30, %v998_v26 }
 0x3a3   : > { %v1236_v35 = vmax.f32 %v1232_v13, %v2384_v29 }
 0x3a4   : > { %v1235_v37 = vmax.f32 %v1231_v15, %v2386_v31  ;;  %v1937_v38 = vpop.f32.mrb[18].mxu1 }
 0x3a5   : > { %v2392_v39 = vadd.f32 %v1937_v38, %v1001_v34  ;;  %v1202_v40 = vpop.f32.mrb[19].mxu1 }
 0x3a6   : > { %v1203_v41 = vadd.f32 %v1202_v40, %v1000_v36 }
 0x3a7   : > { %v1238_v43 = vmax.f32 %v1234_v24, %v2392_v39 }
 0x3a8   : > { %v1237_v45 = vmax.f32 %v1233_v27, %v1203_v41  ;;  %v1940_v46 = vpop.f32.mrb[20].mxu1 }
 0x3a9   : > { %v1218_v47 = vadd.f32 %v1940_v46, %v1003_v42  ;;  %v1212_v48 = vpop.f32.mrb[21].mxu1 }
 0x3aa   : > { %v1213_v49 = vadd.f32 %v1212_v48, %v1002_v44 }
 0x3ab   : > { %v1240_v51 = vmax.f32 %v1236_v35, %v1218_v47 }
 0x3ac   : > { %v1239_v53 = vmax.f32 %v1235_v37, %v1213_v49  ;;  %v1943_v54 = vpop.f32.mrb[22].mxu1 }
 0x3ad   : > { %v1228_v55 = vadd.f32 %v1943_v54, %v1005_v50  ;;  %v1222_v56 = vpop.f32.mrb[23].mxu1 }
 0x3ae   : > { %v1243_v57 = vmax.f32 %v1239_v53, %v1240_v51  ;;  %v1223_v58 = vadd.f32 %v1222_v56, %v1004_v52 }
 0x3af   : > { %v1242_v59 = vmax.f32 %v1238_v43, %v1228_v55 }
 0x3b0   : > { %v1241_v0 = vmax.f32 %v1237_v45, %v1223_v58 }
 0x3b2   : > { %v1244_v60 = vmax.f32 %v1241_v0, %v1242_v59 }
 0x3b4   : > { %v1245_v61 = vmax.f32 %v1243_v57, %v1244_v60 }
 0x3b6   : > { %v1246_v62 = vrot.slane %v1245_v61, 4 }
 0x3b8   : > { %v1247_v63 = vmax.f32 %v1245_v61, %v1246_v62 }
 0x3ba   : > { %v1248_v1 = vrot.slane %v1247_v63, 2 }
 0x3bc   : > { %v1249_v5 = vmax.f32 %v1247_v63, %v1248_v1 }
 0x3be   : > { %v1250_v8 = vrot.slane %v1249_v5, 1 }
 0x3c0   : > { %v1251_v10 = vmax.f32 %v1249_v5, %v1250_v8 }
 0x3c2   : > { %v1252_v11 = vsub.f32 %v2361_v7, %v1251_v10  ;;  %v1253_v13 = vsub.f32 %v2357_v2, %v1251_v10  ;;  %v1254_v14 = vsub.f32 %v1163_v21, %v1251_v10  ;;  %v1255_v15 = vsub.f32 %v2373_v18, %v1251_v10 }
 0x3c3   : > { %v1256_v16 = vsub.f32 %v2364_v9, %v1251_v10  ;;  %v1257_v20 = vsub.f32 %v2359_v4, %v1251_v10  ;;  %v1258_v23 = vsub.f32 %v2377_v22, %v1251_v10  ;;  %v1259_v24 = vsub.f32 %v2375_v19, %v1251_v10 }
 0x3c4   : > { %v1260_v26 = vsub.f32 %v2386_v31, %v1251_v10  ;;  %v1261_v27 = vsub.f32 %v2384_v29, %v1251_v10  ;;  %v1262_v28 = vsub.f32 %v1203_v41, %v1251_v10  ;;  %v1263_v7 = vsub.f32 %v2392_v39, %v1251_v10 }
 0x3c5   : > { %v1264_v30 = vsub.f32 %v1213_v49, %v1251_v10  ;;  %v1265_v2 = vsub.f32 %v1218_v47, %v1251_v10  ;;  %v1266_v21 = vsub.f32 %v1223_v58, %v1251_v10  ;;  %v1268_v34 = vmul.f32 1.442695, %v1252_v11 }
 0x3c6   : > { %v1270_v18 = vmul.f32 1.442695, %v1253_v13  ;;  %v1272_v35 = vmul.f32 1.442695, %v1254_v14  ;;  %v1274_v9 = vmul.f32 1.442695, %v1255_v15  ;;  %v1267_v36 = vsub.f32 %v1228_v55, %v1251_v10 }
 0x3c7   : > { %2087 = vpow2.f32 %v1268_v34  ;;  %v1276_v4 = vmul.f32 1.442695, %v1256_v16  ;;  %v1278_v22 = vmul.f32 1.442695, %v1257_v20  ;;  %v1280_v19 = vmul.f32 1.442695, %v1258_v23 }
 0x3c8   : > { %2089 = vpow2.f32 %v1270_v18  ;;  %v1282_v31 = vmul.f32 1.442695, %v1259_v24  ;;  %v1284_v29 = vmul.f32 1.442695, %v1260_v26  ;;  %v1286_v37 = vmul.f32 1.442695, %v1261_v27 }
 0x3c9   : > { %2091 = vpow2.f32 %v1272_v35  ;;  %v1288_v38 = vmul.f32 1.442695, %v1262_v28  ;;  %v1290_v39 = vmul.f32 1.442695, %v1263_v7  ;;  %v1292_v40 = vmul.f32 1.442695, %v1264_v30  ;;  %v748_v7 = vpop.permute.xlu0 %747 }
 0x3ca   : > { %2093 = vpow2.f32 %v1274_v9  ;;  %v1294_v41 = vmul.f32 1.442695, %v1265_v2  ;;  %v1296_v43 = vmul.f32 1.442695, %v1266_v21  ;;  %v1298_v45 = vmul.f32 1.442695, %v1267_v36 }
 0x3cb   : > { %2095 = vpow2.f32 %v1276_v4  ;;  %v879_v18 = vadd.f32 %v2318_v25, %v748_v7  ;;  %v396_v4 = vld [vmem:[%s2297_s30 + $0x20] sm:$0xff] }
 0x3cc   : > { %2097 = vpow2.f32 %v1278_v22 }
 0x3cd   : > { %2099 = vpow2.f32 %v1280_v19  ;;  %v753_v34 = vpop.permute.xlu0 %752 }
 0x3ce   : > { %2101 = vpow2.f32 %v1282_v31  ;;  %v884_v35 = vadd.f32 %v2326_v33, %v753_v34 }
 0x3cf   : > { %2103 = vpow2.f32 %v1284_v29 }
 0x3d0   : > { %2105 = vpow2.f32 %v1286_v37 }
 0x3d1   : > { %v2088_v42 = vpop.eup %2087  ;;  %2107 = vpow2.f32 %v1288_v38  ;;  %v758_v9 = vpop.permute.xlu0 %757 }
 0x3d2   : > { %v2090_v44 = vpop.eup %2089  ;;  %2109 = vpow2.f32 %v1290_v39  ;;  %v889_v36 = vadd.f32 %v2324_v32, %v758_v9 }
 0x3d3   : > { %v2092_v46 = vpop.eup %2091  ;;  %2111 = vpow2.f32 %v1292_v40  ;;  %v1300_v47 = vadd.f32 %v2090_v44, %v2088_v42  ;;  %v2023_v48 = vpack.c.bf16 %v2090_v44, %v2088_v42 }
 0x3d4   : > { %v2094_v49 = vpop.eup %2093  ;;  %2113 = vpow2.f32 %v1294_v41 }
 0x3d5   : > { %v2096_v50 = vpop.eup %2095  ;;  %2115 = vpow2.f32 %v1296_v43  ;;  %v1301_v51 = vadd.f32 %v2092_v46, %v1300_v47  ;;  %2024 = vmatprep.subr.bf16.mxu0 %v2023_v48  ;;  %v2027_v52 = vpack.c.bf16 %v2094_v49, %v2092_v46 }
 0x3d6   : > { %v2098_v53 = vpop.eup %2097  ;;  %2026 = vmatpush3.bf16.msra.mxu0 %v2023_v48  ;;  %2117 = vpow2.f32 %v1298_v45 }
 0x3d7   : > { %v2100_v54 = vpop.eup %2099  ;;  %v1302_v55 = vadd.f32 %v2094_v49, %v1301_v51  ;;  %2028 = vmatprep.subr.bf16.mxu0 %v2027_v52  ;;  %v2031_v56 = vpack.c.bf16 %v2098_v53, %v2096_v50  ;;  %v397_v51 = vld [vmem:[%s2297_s30 + $0x28] sm:$0xff] }
 0x3d8   : > { %v2102_v57 = vpop.eup %2101 }
 0x3d9   : > { %v2104_v58 = vpop.eup %2103  ;;  %v1303_v59 = vadd.f32 %v2096_v50, %v1302_v55  ;;  %v2035_v0 = vpack.c.bf16 %v2102_v57, %v2100_v54 }
 0x3da   : > { %v2106_v60 = vpop.eup %2105  ;;  %2030 = vmatpush3.bf16.msra.mxu0 %v2027_v52  ;;  %v398_v52 = vld [vmem:[%s2297_s30 + $0x30] sm:$0xff] }
 0x3db   : > { %v2108_v61 = vpop.eup %2107  ;;  %v1304_v62 = vadd.f32 %v2098_v53, %v1303_v59  ;;  %2032 = vmatprep.subr.bf16.mxu0 %v2031_v56  ;;  %v2039_v63 = vpack.c.bf16 %v2106_v60, %v2104_v58  ;;  %v1418_v53 = vpop.permute.xlu0 %1417 }
 0x3dc   : > { %v2110_v1 = vpop.eup %2109 }
 0x3dd   : > { %v2112_v5 = vpop.eup %2111  ;;  %v1305_v8 = vadd.f32 %v2100_v54, %v1304_v62  ;;  %v2043_v10 = vpack.c.bf16 %v2110_v1, %v2108_v61 }
 0x3de   : > { %v2114_v11 = vpop.eup %2113  ;;  %2034 = vmatpush3.bf16.msra.mxu0 %v2031_v56 }
 0x3df   : > { %v2116_v13 = vpop.eup %2115  ;;  %v1306_v14 = vadd.f32 %v2102_v57, %v1305_v8  ;;  %2036 = vmatprep.subr.bf16.mxu0 %v2035_v0  ;;  %v2047_v15 = vpack.c.bf16 %v2114_v11, %v2112_v5 }
 0x3e0   : > { %v2118_v16 = vpop.eup %2117 }
 0x3e1   : > { %v1307_v20 = vadd.f32 %v2104_v58, %v1306_v14  ;;  %v2051_v23 = vpack.c.bf16 %v2118_v16, %v2116_v13 }
 0x3e2   : > { %2038 = vmatpush3.bf16.msra.mxu0 %v2035_v0 }
 0x3e3   : > { %v1308_v24 = vadd.f32 %v2106_v60, %v1307_v20  ;;  %2040 = vmatprep.subr.bf16.mxu0 %v2039_v63 }
 0x3e5   : > { %v1309_v26 = vadd.f32 %v2108_v61, %v1308_v24 }
 0x3e6   : > { %2042 = vmatpush3.bf16.msra.mxu0 %v2039_v63 }
 0x3e7   : > { %v1310_v27 = vadd.f32 %v2110_v1, %v1309_v26  ;;  %2044 = vmatprep.subr.bf16.mxu0 %v2043_v10 }
 0x3e9   : > { %v1311_v28 = vadd.f32 %v2112_v5, %v1310_v27 }
 0x3ea   : > { %2046 = vmatpush3.bf16.msra.mxu0 %v2043_v10 }
 0x3eb   : > { %v1312_v30 = vadd.f32 %v2114_v11, %v1311_v28  ;;  %2048 = vmatprep.subr.bf16.mxu0 %v2047_v15  ;;  %v400_v11 = vld [vmem:[%s2297_s30 + $0x40] sm:$0xf] }
 0x3ed   : > { %v1313_v2 = vadd.f32 %v2116_v13, %v1312_v30 }
 0x3ee   : > { %2050 = vmatpush3.bf16.msra.mxu0 %v2047_v15 }
 0x3ef   : > { %v1314_v21 = vadd.f32 %v2118_v16, %v1313_v2  ;;  %2052 = vmatprep.subr.bf16.mxu0 %v2051_v23 }
 0x3f1   : > { %v1315_v22 = vrot.slane %v1314_v21, 4 }
 0x3f2   : > { %2054 = vmatpush3.bf16.msra.mxu0 %v2051_v23 }
 0x3f3   : > { %v1316_v19 = vadd.f32 %v1315_v22, %v1314_v21 }
 0x3f5   : > { %1977 = vmatmul.mubr.f32.vlgmr.msra.gmra.mrb[12].mxu0 %v879_v18  ;;  %v1317_v31 = vrot.slane %v1316_v19, 2 }
 0x3f6   : > { %1979 = vmatprep.mubr.f32.mxu0 %v884_v35 }
 0x3f7   : > { %v1318_v29 = vadd.f32 %v1317_v31, %v1316_v19 }
 0x3f9   : > { %1980 = vmatmul.mubr.f32.gmra.mrb[14].mxu0 %v889_v36  ;;  %v1319_v37 = vrot.slane %v1318_v29, 1 }
 0x3fa   : > { %1990 = vmatprep.mubr.msk.f32.mxu0 %vm892_vm3, %v396_v4 }
 0x3fb   : > { %v1320_v38 = vadd.f32 %v1319_v37, %v1318_v29 }
 0x3fd   : > { %2119 = vrcp.f32 %v1320_v38 }
 0x407   : > { %v2120_v39 = vpop.eup %2119 }
 0x4c8   : > { %v1978_v25 = vpop.f32.mrb[12].mxu0 }
 0x4c9   : > { %v1408_v40 = vmul.f32 %v2120_v39, %v1978_v25  ;;  %v1387_v33 = vpop.f32.mrb[13].mxu0 }
 0x4ca   : > { %v1407_v41 = vmul.f32 %v2120_v39, %v1387_v33 }
 0x4cb   : > { %v1412_v32 = vadd.f32 %v1408_v40, %v2302_v3  ;;  %v399_v3 = vld [vmem:[%s2297_s30 + $0x38] sm:$0xff] }
 0x4cc   : > { %v1411_v42 = vadd.f32 %v1407_v41, %v2305_v6  ;;  %v1981_v43 = vpop.f32.mrb[14].mxu0  ;;  %v2147_v6 = vmov 0.0|0.0  }
 0x4cd   : > { %v1410_v44 = vmul.f32 %v2120_v39, %v1981_v43  ;;  %v1397_v45 = vpop.f32.mrb[15].mxu0  ;;  %2063 = vmatprep.subr.bf16.mxu1 %v2147_v6 }
 0x4ce   : > { %v1409_v46 = vmul.f32 %v2120_v39, %v1397_v45  ;;  %v2055_v47 = vpack.c.bf16 %v1412_v32, %v1411_v42 }
 0x4cf   : > { %v1414_v48 = vadd.f32 %v1410_v44, %v2310_v12  ;;  %v1423_v12 = vpop.permute.xlu0 %1422 }
 0x4d0   : > { %v1413_v49 = vadd.f32 %v1409_v46, %v2313_v17  ;;  %2056 = vmatprep.subr.bf16.mxu0 %v2055_v47 }
 0x4d1   : > { %2058 = vmatpush3.bf16.msra.mxu0 %v2055_v47 }
 0x4d2   : > { %v2059_v50 = vpack.c.bf16 %v1414_v48, %v1413_v49 }
 0x4d3   : > { %v1428_v54 = vpop.permute.xlu0 %1427 }
 0x4d4   : > { %2060 = vmatprep.subr.bf16.mxu0 %v2059_v50 }
 0x4d5   : > { %2062 = vmatpush3.bf16.msra.mxu0 %v2059_v50 }
 0x4d7   : > { %v1433_v59 = vpop.permute.xlu0 %1432 }
 0x4d8   : > { %1991 = vmatmul.mubr.msk.f32.vlgmr.msra.gmra.mrb[16].mxu0 %vm892_vm3, %v397_v51 }
 0x4d9   : > { %1993 = vmatprep.mubr.msk.f32.mxu0 %vm892_vm3, %v398_v52 }
 0x4db   : > { %v1539_v13 = vpop.permute.xlu0 %1538 }
 0x4dc   : > { %1994 = vmatmul.mubr.msk.f32.gmra.mrb[18].mxu0 %vm892_vm3, %v399_v3 }
 0x5ab   : > { %v1992_v17 = vpop.f32.mrb[16].mxu0 }
 0x5ac   : > { %v1519_v55 = vadd.f32 %v1992_v17, %v1423_v12  ;;  %v1513_v56 = vpop.f32.mrb[17].mxu0 }
 0x5ad   : > { %v1514_v57 = vadd.f32 %v1513_v56, %v1418_v53 }
 0x5ae   : > { %v1533_v58 = vmax.f32 %v1519_v55, 0.0 }
 0x5af   : > { %v1532_v0 = vmax.f32 %v1514_v57, 0.0  ;;  %v1995_v60 = vpop.f32.mrb[18].mxu0 }
 0x5b0   : > { %v1529_v61 = vadd.f32 %v1995_v60, %v1433_v59  ;;  %v1523_v62 = vpop.f32.mrb[19].mxu0 }
 0x5b1   : > { %v2064_v63 = vpack.c.bf16 %v1533_v58, %v1532_v0  ;;  %v1524_v1 = vadd.f32 %v1523_v62, %v1428_v54 }
 0x5b2   : > { %v1535_v5 = vmax.f32 %v1529_v61, 0.0 }
 0x5b3   : > { %v1534_v8 = vmax.f32 %v1524_v1, 0.0  ;;  %2065 = vmatpush3.bf16.msra.mxu1 %v2064_v63 }
 0x5b4   : > { %2066 = vmatprep.subr.bf16.mxu1 %v2147_v6 }
 0x5b5   : > { %v2067_v10 = vpack.c.bf16 %v1535_v5, %v1534_v8 }
 0x5b7   : > { %2068 = vmatpush3.bf16.msra.mxu1 %v2067_v10 }
 0x5ba   : > { %2005 = vmatmul.mubr.msk.f32.vlgmr.msra.gmra.mrb[24].mxu1 %vm892_vm3, %v400_v11 }
 0x68d   : > { %v1610_v14 = vpop.f32.mrb[24].mxu1 }
 0x68e   : > { %v1611_v15 = vadd.f32 %v1610_v14, %v1539_v13  ;;  %v2006_v16 = vpop.f32.mrb[25].mxu1 }
 0x690   : > { %1614 = vst [vmem:[%s378_s15] sm:$0xf] %v1611_v15 }
 0x691 PF: > { %s23_s29 = sadd.s32 1, %s2141_s29  }
 0x692   : > { %p20_p13 = scmp.ge.s32.totalorder %s23_s29, 7  }
 0x694   :  { %22 = sbr.rel (!%p20_p13) target bundleno = 16 (0x10), region = 89 }

</bundles_post_ra>
